<compile_context>
chip_gen: v5e
topology: v5e:2x2
jax: 0.10.0
libtpu: 0.0.40
codegen_flags: <defaults>
</compile_context>

<pallas_src>
import numpy as np

import jax
import jax.numpy as jnp
from jax.experimental import pallas as pl
from jax.experimental.pallas import tpu as pltpu

NEG_SLOPE = 0.3
BN_EPS = 1e-5


def _round_up(n, m):
    return ((n + m - 1) // m) * m


def _lrelu(v):
    return jnp.where(v >= 0, v, NEG_SLOPE * v)


# ----------------------------------------------------------------------------
# pltpu.roll direction probe (robust against convention differences).
# ----------------------------------------------------------------------------
_ROLL_SIGN = None


def _roll_sign():
    """Returns +1 if pltpu.roll(x, 1, axis)[l] == x[l-1] (np.roll convention), else -1."""
    global _ROLL_SIGN
    if _ROLL_SIGN is not None:
        return _ROLL_SIGN

    def probe_kernel(x_ref, o_ref):
        o_ref[...] = pltpu.roll(x_ref[...], 1, 1)

    x = jnp.tile(jnp.arange(128, dtype=jnp.float32)[None, :], (8, 1))
    y = pl.pallas_call(
        probe_kernel, out_shape=jax.ShapeDtypeStruct((8, 128), jnp.float32))(x)
    v = int(jnp.round(y[0, 1]))
    if v == 0:
        _ROLL_SIGN = 1
    elif v == 2:
        _ROLL_SIGN = -1
    else:
        raise RuntimeError(f"unexpected pltpu.roll probe value: {v}")
    return _ROLL_SIGN


# ----------------------------------------------------------------------------
# Residual block: Pallas kernel
# ----------------------------------------------------------------------------
_BLOCK_CALL_CACHE = {}


def _build_block_call(B, c_in_p, c_out_p, L_pad, Lp_pad, L_real, downsample, roll_sign):
    cache_key = (B, c_in_p, c_out_p, L_pad, Lp_pad, L_real, downsample, roll_sign)
    if cache_key in _BLOCK_CALL_CACHE:
        return _BLOCK_CALL_CACHE[cache_key]

    n_sel_blocks = Lp_pad // 128

    def kernel(*refs):
        if downsample:
            x_ref, par_ref, w1_ref, w2_ref, wds_ref, o_ref = refs
        else:
            x_ref, par_ref, w1_ref, w2_ref, o_ref = refs

        x = x_ref[0]                                   # (c_in_p, L_pad) f32
        par = par_ref[...]                             # (c_out_p, 8) f32
        b1 = par[:, 0:1]
        bn2s = par[:, 1:2]
        bn2b = par[:, 2:3]
        b2 = par[:, 3:4]
        bds = par[:, 4:5]

        def roll_l(a, k):
            # circular roll along lanes; k is interpreted in np.roll terms, the detected
            # hardware convention is folded in by the caller via roll_sign.
            return pltpu.roll(a, k % L_pad, 1)

        def conv3(a, w_ref):
            # a: (C, L_pad) f32 ; w_ref: (c_out_p, 3*C) bf16 packed [tap0 | tap1 | tap2].
            # One fused MXU matmul over the stacked, lane-aligned shifted activations.
            C = a.shape[0]
            lane = jax.lax.broadcasted_iota(jnp.int32, (C, L_pad), 1)
            left = jnp.where(lane == 0, 0.0, roll_l(a, roll_sign))          # a[l-1]
            right = jnp.where(lane == L_pad - 1, 0.0, roll_l(a, -roll_sign))  # a[l+1]
            rhs = jnp.concatenate([left, a, right], axis=0).astype(jnp.bfloat16)
            return jnp.dot(w_ref[...], rhs, preferred_element_type=jnp.float32)

        # NOTE: torch forward applies conv1 to the RAW x (bn1 branch is dead code).
        c1 = conv3(x, w1_ref) + b1
        h2 = _lrelu(bn2s * c1 + bn2b)
        # Zero the padded tail so conv2 sees the true zero padding at column L_real.
        lane_o = jax.lax.broadcasted_iota(jnp.int32, (c_out_p, L_pad), 1)
        h2 = jnp.where(lane_o >= L_real, 0.0, h2)
        c2 = conv3(h2, w2_ref) + b2

        if downsample:
            ident = jnp.dot(wds_ref[...], x.astype(jnp.bfloat16),
                            preferred_element_type=jnp.float32) + bds
        else:
            ident = x                                   # c_in_p == c_out_p

        out = c2 + ident                                # (c_out_p, L_pad) f32

        # MaxPool1d(kernel=3, stride=3): max of lane-rolled copies (XLU), then stride-3
        # decimation via lane-aligned (C,384)x(384,128) selection matmuls (MXU).
        m = jnp.maximum(out, roll_l(out, -roll_sign))           # out[l+1]
        m = jnp.maximum(m, roll_l(out, -2 * roll_sign))         # out[l+2]
        sel = (jax.lax.broadcasted_iota(jnp.int32, (384, 128), 0)
               == 3 * jax.lax.broadcasted_iota(jnp.int32, (384, 128), 1)
               ).astype(jnp.float32)
        parts = []
        for k in range(n_sel_blocks):
            blk = m[:, 384 * k:384 * (k + 1)]                    # lane-aligned slice
            parts.append(jnp.dot(blk, sel, preferred_element_type=jnp.float32))
        pooled = parts[0] if n_sel_blocks == 1 else jnp.concatenate(parts, axis=1)
        o_ref[0] = pooled                                        # lane-dense store

    in_specs = [
        pl.BlockSpec((1, c_in_p, L_pad), lambda b: (b, 0, 0)),        # activations
        pl.BlockSpec((c_out_p, 8), lambda b: (0, 0)),                 # packed channel params
        pl.BlockSpec((c_out_p, 3 * c_in_p), lambda b: (0, 0)),        # conv1 weights (bf16)
        pl.BlockSpec((c_out_p, 3 * c_out_p), lambda b: (0, 0)),       # conv2 weights (bf16)
    ]
    if downsample:
        in_specs.append(pl.BlockSpec((c_out_p, c_in_p), lambda b: (0, 0)))  # 1x1 conv (bf16)

    call = pl.pallas_call(
        kernel,
        out_shape=jax.ShapeDtypeStruct((B, c_out_p, Lp_pad), jnp.float32),
        grid=(B,),
        in_specs=in_specs,
        out_specs=pl.BlockSpec((1, c_out_p, Lp_pad), lambda b: (b, 0, 0)),
        compiler_params=pltpu.CompilerParams(
            dimension_semantics=("parallel",),
            vmem_limit_bytes=32 * 1024 * 1024),
    )
    _BLOCK_CALL_CACHE[cache_key] = call
    return call


def _pack_conv_weight(w, c_out_p, c_in_p):
    """torch-layout (C_out, C_in, 3) -> (C_out_p, 3*C_in_p) bf16, taps packed [k0|k1|k2]."""
    co, ci, _ = w.shape
    w = jnp.pad(w.astype(jnp.float32), ((0, c_out_p - co), (0, c_in_p - ci), (0, 0)))
    return jnp.concatenate([w[:, :, 0], w[:, :, 1], w[:, :, 2]], axis=1).astype(jnp.bfloat16)


def residual_block_pallas(x, bp):
    """Residual_blockBaseline.forward (inference): (B, C_in, L) -> (B, C_out, (L-3)//3+1)."""
    B, C_in, L = x.shape
    C_out = bp['w1'].shape[0]
    downsample = bool(bp['downsample'])
    if not downsample:
        assert C_in == C_out
    Lp_real = (L - 3) // 3 + 1
    c_in_p = _round_up(C_in, 8)
    c_out_p = _round_up(C_out, 8)
    L_pad = _round_up(L, 384)          # pooled length becomes a multiple of 128 (lane dense)
    Lp_pad = L_pad // 3
    roll_sign = _roll_sign()

    x_pad = jnp.pad(x.astype(jnp.float32),
                    ((0, 0), (0, c_in_p - C_in), (0, L_pad - L)))
    w1cat = _pack_conv_weight(bp['w1'], c_out_p, c_in_p)
    w2cat = _pack_conv_weight(bp['w2'], c_out_p, c_out_p)

    def padc(v):
        return jnp.pad(v.astype(jnp.float32), (0, c_out_p - v.shape[0]))

    zeros = jnp.zeros((c_out_p,), jnp.float32)
    parpack = jnp.stack(
        [padc(bp['b1']), padc(bp['bn2_s']), padc(bp['bn2_b']), padc(bp['b2']),
         padc(bp['bds']) if downsample else zeros, zeros, zeros, zeros], axis=1)

    args = [x_pad, parpack, w1cat, w2cat]
    if downsample:
        wds = jnp.pad(bp['wds'].astype(jnp.float32),
                      ((0, c_out_p - C_out), (0, c_in_p - C_in))).astype(jnp.bfloat16)
        args.append(wds)

    call = _build_block_call(B, c_in_p, c_out_p, L_pad, Lp_pad, L, downsample, roll_sign)
    out = call(*args)
    return out[:, :C_out, :Lp_real]


# ----------------------------------------------------------------------------
# Pure-JAX reference of the residual block (independent structure; conv operands are
# rounded to bf16 to match the kernel's mixed-precision contract).
# ----------------------------------------------------------------------------
def residual_block_ref(x, bp):
    B, C_in, L = x.shape

    def conv3(h, w, b):
        co = w.shape[0]
        hp = jnp.pad(h, ((0, 0), (0, 0), (1, 1)))
        hb = hp.astype(jnp.bfloat16).astype(jnp.float32)
        wb = w.astype(jnp.bfloat16).astype(jnp.float32)
        out = jnp.zeros((B, co, L), jnp.float32)
        for k in range(3):
            out = out + jnp.einsum('oi,bil->bol', wb[:, :, k], hb[:, :, k:k + L])
        return out + b[None, :, None]

    c1 = conv3(x, bp['w1'], bp['b1'])          # conv1 consumes the raw x (per torch forward)
    h2 = _lrelu(bp['bn2_s'][None, :, None] * c1 + bp['bn2_b'][None, :, None])
    c2 = conv3(h2, bp['w2'], bp['b2'])
    if bp['downsample']:
        ident = jnp.einsum('oi,bil->bol',
                           bp['wds'].astype(jnp.bfloat16).astype(jnp.float32),
                           x.astype(jnp.bfloat16).astype(jnp.float32))
        ident = ident + bp['bds'][None, :, None]
    else:
        ident = x
    out = c2 + ident
    C_out = out.shape[1]
    Lp = (L - 3) // 3 + 1
    return jnp.max(out[:, :, :3 * Lp].reshape(B, C_out, Lp, 3), axis=-1)


# ----------------------------------------------------------------------------
# Remaining encoder pieces (plain JAX / XLA).
# ----------------------------------------------------------------------------
def _maxpool3(x):
    B, C, L = x.shape
    Lp = (L - 3) // 3 + 1
    return jnp.max(x[:, :, :3 * Lp].reshape(B, C, Lp, 3), axis=-1)


def make_sinc_filters(out_channels, kernel_size, sample_rate=16000):
    if kernel_size % 2 == 0:
        kernel_size += 1
    NFFT = 512
    f = int(sample_rate / 2) * np.linspace(0, 1, int(NFFT / 2) + 1)
    fmel = 2595 * np.log10(1 + f / 700)
    fmelbands = np.linspace(np.min(fmel), np.max(fmel), out_channels + 1)
    mel = 700 * (10 ** (fmelbands / 2595) - 1)
    hsupp = np.arange(-(kernel_size - 1) / 2, (kernel_size - 1) / 2 + 1)
    ham = np.hamming(kernel_size)
    band_pass = np.zeros((out_channels, kernel_size))
    for i in range(out_channels):
        fmin, fmax = mel[i], mel[i + 1]
        h_high = 2 * fmax / sample_rate * np.sinc(2 * fmax * hsupp / sample_rate)
        h_low = 2 * fmin / sample_rate * np.sinc(2 * fmin * hsupp / sample_rate)
        band_pass[i, :] = ham * (h_high - h_low)
    return jnp.asarray(band_pass[:, None, :], jnp.float32)


def _gru_last_hidden(x, gru_params):
    """PyTorch-compatible single-layer GRU (batch_first); returns last hidden state."""
    w_ih, w_hh, b_ih, b_hh = gru_params
    H = w_hh.shape[1]

    def step(h, xt):
        gi = xt @ w_ih.T + b_ih
        gh = h @ w_hh.T + b_hh
        i_r, i_z, i_n = jnp.split(gi, 3, axis=-1)
        h_r, h_z, h_n = jnp.split(gh, 3, axis=-1)
        r = jax.nn.sigmoid(i_r + h_r)
        z = jax.nn.sigmoid(i_z + h_z)
        n = jnp.tanh(i_n + r * h_n)
        return (1.0 - z) * n + z * h, None

    h0 = jnp.zeros((x.shape[0], H), x.dtype)
    hT, _ = jax.lax.scan(step, h0, jnp.transpose(x, (1, 0, 2)))
    return hT


def rawnet_encoder_forward(x, params):
    """x: (B, nb_samp) f32 -> (B, nb_fc_node) f32."""
    x = x[:, None, :]
    x = jax.lax.conv_general_dilated(
        x, params['sinc_filters'], (1,), [(0, 0)],
        dimension_numbers=('NCH', 'OIH', 'NCH'))
    x = _maxpool3(jnp.abs(x))
    x = params['first_bn_s'][None, :, None] * x + params['first_bn_b'][None, :, None]
    x = jax.nn.selu(x)
    for i in range(6):
        xb = residual_block_pallas(x, params['blocks'][i])        # Pallas kernel
        y = jnp.mean(xb, axis=-1) @ params['att_w'][i].T + params['att_b'][i]
        y = jax.nn.sigmoid(y)[:, :, None]
        x = xb * y + y
    x = params['bng_s'][None, :, None] * x + params['bng_b'][None, :, None]
    x = jax.nn.selu(x)
    x = jnp.transpose(x, (0, 2, 1))
    h = _gru_last_hidden(x, params['gru'])
    return h @ params['fc1_w'].T + params['fc1_b']


# ----------------------------------------------------------------------------
# Deterministic synthetic parameters.
# ----------------------------------------------------------------------------
def make_encoder_params(key, d_args):
    assert d_args['nb_gru_layer'] == 1
    filts = d_args['filts']
    keys = iter(jax.random.split(key, 128))

    def nrm(shape, s=0.2):
        return s * jax.random.normal(next(keys), shape, jnp.float32)

    def fold_bn(c):
        gamma = 1.0 + 0.1 * jax.random.normal(next(keys), (c,), jnp.float32)
        beta = 0.1 * jax.random.normal(next(keys), (c,), jnp.float32)
        mean = 0.1 * jax.random.normal(next(keys), (c,), jnp.float32)
        var = jnp.abs(1.0 + 0.1 * jax.random.normal(next(keys), (c,), jnp.float32))
        s = gamma / jnp.sqrt(var + BN_EPS)
        return s, beta - mean * s

    params = {'sinc_filters': make_sinc_filters(filts[0], d_args['first_conv'])}
    params['first_bn_s'], params['first_bn_b'] = fold_bn(filts[0])

    block_io = [tuple(filts[1]), tuple(filts[1]), tuple(filts[2]),
                tuple(filts[3]), tuple(filts[3]), tuple(filts[3])]
    blocks, att_w, att_b = [], [], []
    for (ci, co) in block_io:
        bp = {'w1': nrm((co, ci, 3)), 'b1': nrm((co,), 0.1),
              'w2': nrm((co, co, 3)), 'b2': nrm((co,), 0.1),
              'downsample': ci != co}
        bp['bn2_s'], bp['bn2_b'] = fold_bn(co)
        if bp['downsample']:
            bp['wds'] = nrm((co, ci))
            bp['bds'] = nrm((co,), 0.1)
        blocks.append(bp)
        att_w.append(nrm((co, co)))
        att_b.append(nrm((co,), 0.1))
    params['blocks'] = blocks
    params['att_w'] = att_w
    params['att_b'] = att_b

    params['bng_s'], params['bng_b'] = fold_bn(filts[2][-1])
    H, C = d_args['gru_node'], filts[2][-1]
    params['gru'] = (nrm((3 * H, C)), nrm((3 * H, H)), nrm((3 * H,), 0.1), nrm((3 * H,), 0.1))
    params['fc1_w'] = nrm((d_args['nb_fc_node'], H))
    params['fc1_b'] = nrm((d_args['nb_fc_node'],), 0.1)
    return params


# ----------------------------------------------------------------------------
if __name__ == "__main__":
    d_args = {
        'in_channels': 1,
        'first_conv': 5,                       # sinc kernel size
        'filts': [16, [16, 16], [16, 32], [32, 32]],
        'gru_node': 32,
        'nb_gru_layer': 1,
        'nb_fc_node': 32,
        'nb_classes': 2,
    }
    NB_SAMP = 4378

    key = jax.random.PRNGKey(0)
    kp, kx, kt = jax.random.split(key, 3)
    params = make_encoder_params(kp, d_args)

    # Sequence lengths seen by each residual block.
    K = params['sinc_filters'].shape[-1]
    L = NB_SAMP - K + 1
    L = (L - 3) // 3 + 1                       # front max_pool1d(3)
    block_lens = []
    for _ in range(6):
        block_lens.append(L)
        L = (L - 3) // 3 + 1
    assert L >= 1

    # --- per-block Pallas kernel vs JAX reference (covers no-ds, ds, tiny-L configs) ---
    for i in (0, 2, 5):
        bp = params['blocks'][i]
        c_in = bp['w1'].shape[1]
        xb = jax.random.normal(jax.random.fold_in(kt, i), (2, c_in, block_lens[i]),
                               jnp.float32)
        got = jax.block_until_ready(residual_block_pallas(xb, bp))
        want = residual_block_ref(xb, bp)
        assert got.shape == want.shape, (got.shape, want.shape)
        assert jnp.allclose(got, want, atol=1e-2, rtol=2e-2), \
            (i, float(jnp.max(jnp.abs(got - want))))

    # --- full encoder forward (Pallas residual blocks + XLA glue) ---
    x = jax.random.normal(kx, (2, NB_SAMP), jnp.float32)
    out = jax.block_until_ready(rawnet_encoder_forward(x, params))
    assert out.shape == (2, d_args['nb_fc_node']), out.shape
    assert bool(jnp.all(jnp.isfinite(out)))

    print("KERNEL_OK")
</pallas_src>

<mosaic_0001>
module attributes {stable_mosaic.version = 11 : i64} {
  func.func @probe_kernel(%arg0: memref<8x128xf32, #tpu.memory_space<vmem>>, %arg1: memref<8x128xf32, #tpu.memory_space<vmem>>) attributes {dimension_semantics = [], scalar_prefetch = 0 : i64, scratch_operands = 0 : i64, tpu.core_type = #tpu.core_type<tc>} {
    %c0 = arith.constant 0 : index
    %c0_0 = arith.constant 0 : index
    %0 = vector.load %arg0[%c0, %c0_0] : memref<8x128xf32, #tpu.memory_space<vmem>>, vector<8x128xf32>
    %c1_i32 = arith.constant 1 : i32
    %1 = tpu.dynamic_rotate %0 by %c1_i32 dim 1 : vector<8x128xf32>, i32 -> vector<8x128xf32>
    %c0_1 = arith.constant 0 : index
    %c0_2 = arith.constant 0 : index
    %2 = vector.load %arg1[%c0_1, %c0_2] : memref<8x128xf32, #tpu.memory_space<vmem>>, vector<8x128xf32>
    tpu.vector_store %arg1[%c0_1, %c0_2], %1 {strides = array<i32>} : memref<8x128xf32, #tpu.memory_space<vmem>>, vector<8x128xf32>,
    return
  }
}

</mosaic_0001>

<bundles_post_ra>
// kernel: tpu_custom_call.1
= control target key start
LH: loop header
LB: loop body
LE: loop exit
PB: predicated region body
PF: predicated region fallthrough
CT: control target
= control target key end

     0   :  { %6 = vsyncpa [#allocation3], 0  ;;  %s118_s0 = inlined_call_operand.hbm [shape: f32[8,128], index: 0, kind: input, shape index: {}]   ;;  %s119_s1 = inlined_call_operand.hbm [shape: f32[8,128], index: 1, kind: output, shape index: {}]  }
   0x1   :  { %7 = vsyncpa [#allocation4], 0  ;;  %s13_s8 = sshll.u32 %s118_s0, 4  ;;  %s99_s9 = smov [#allocation2]   ;;  %s14_s8 = int_to_ptr.hbm [resolvable:$true] %s13_s8 }
   0x2   :  { %s15_s10 = sshll.u32 %s99_s9, 4  ;;  %s16_s10 = int_to_ptr.vmem [resolvable:$true] %s15_s10 }
   0x3   :  { %18 = dma.hbm_to_vmem [thread:$0]  %s14_s8, 128, %s16_s10, [#allocation3]  }
   0x4   :  { %95 = dma.done.wait [#allocation3], 128  }
   0x5   :  { %96 = vsyncadd [#allocation3], 4294967168  ;;  %v23_v0 = vld [vmem:[#allocation2] sm:$0xff]  ;;  %s100_s11 = smov 1   ;;  %s101_s12 = smov [#allocation5]  }
   0x6   :  { %24 = vrot.lane.b32.xlu0 %v23_v0, %s100_s11  ;;  %s32_s13 = sshll.u32 %s101_s12, 4  ;;  %s34_s16 = sshll.u32 %s119_s1, 4  ;;  %s33_s13 = int_to_ptr.vmem [resolvable:$true] %s32_s13  ;;  %s35_s16 = int_to_ptr.hbm [resolvable:$true] %s34_s16 }
  0x78   :  { %v25_v1 = vpop.permute.xlu0 %24 }
  0x79   :  { %26 = vst [vmem:[#allocation5] sm:$0xff] %v25_v1 }
  0x7a   :  { %37 = dma.vmem_to_hbm [thread:$0]  %s33_s13, 128, %s35_s16, [#allocation4]  }
  0x7b   :  { %97 = dma.done.wait [#allocation4], 128  }
  0x7c   :  { %98 = vsyncadd [#allocation4], 4294967168 }
  0x7d   :  { %42 = vsyncpa [#allocation3], 1 }
  0x7e   :  { %43 = vsyncpa [#allocation4], 1 }

</bundles_post_ra>
